<compile_context>
chip_gen: v6e
topology: v6e:2x2x1
jax: 0.10.0
libtpu: 0.0.40
codegen_flags: <defaults>
</compile_context>

<pallas_src>
import jax
import jax.numpy as jnp
from jax import lax
from jax.experimental import pallas as pl
from jax.experimental.pallas import tpu as pltpu

EPS = 1e-5  # PyTorch InstanceNorm2d default


def _vmem_capacity_bytes():
    """Physical VMEM per core; conservative fallback if the query is unavailable."""
    try:
        return int(pltpu.get_tpu_info().vmem_capacity_bytes)
    except Exception:
        return 64 << 20  # v7x-sized (smallest current generation) => safe everywhere


# --------------- fast path: one (C, HW) block per batch element ---------------

def _make_mam_kernel(inv_hw):
    """inv_hw = 1 / (true H*W); baked in as a trace-time constant."""

    def mam_kernel(x_ref, w1t_ref, w2_ref, o_ref):
        x = x_ref[0]                                   # (C, HW), I/O dtype
        xf = x.astype(jnp.float32)

        # One-pass pooled mean + InstanceNorm stats (f32 accumulation).
        # NOTE: var = E[x^2] - mean^2 can cancel for large-mean inputs; fine
        # for typical activations (clamped at 0).
        s1 = jnp.sum(xf, axis=1, keepdims=True)            # (C, 1)
        s2 = jnp.sum(xf * xf, axis=1, keepdims=True)       # (C, 1)
        mean = s1 * inv_hw                                  # == pooled
        var = jnp.maximum(s2 * inv_hw - mean * mean, 0.0)
        inv_std = lax.rsqrt(var + EPS)

        # Channel attention (two 1x1 convs on the pooled vector): tiny (C, Cr)
        # work, deliberately kept on VPU/XLU, not the MXU.
        hidden = jnp.maximum(
            jnp.sum(w1t_ref[...] * mean, axis=0, keepdims=True), 0.0)       # (1, Cr)
        logits = jnp.sum(w2_ref[...] * hidden, axis=1, keepdims=True)       # (C, 1)
        mask = jax.nn.sigmoid(logits)

        # Fused blend: x*mask + (x-mean)*inv_std*(1-mask) == x*a + b.
        one_m = 1.0 - mask
        a = mask + one_m * inv_std
        b = -(mean * one_m * inv_std)

        if o_ref.dtype == jnp.bfloat16:
            # bf16 VALU blend (v6e/v7x): no per-element f32 down/upcast on the
            # store path, keeps the kernel HBM-bound even on v7x.
            o_ref[0] = x * a.astype(jnp.bfloat16) + b.astype(jnp.bfloat16)
        else:
            o_ref[0] = (xf * a + b).astype(o_ref.dtype)

    return mam_kernel


def _mam_single_block(x3, w1, w2, hw_true, vmem_needed, vmem_cap):
    N, C, HW_p = x3.shape
    Cr = w1.shape[0]
    w1t = jnp.transpose(w1.reshape(Cr, C)).astype(jnp.float32)   # (C, Cr)
    w2m = w2.reshape(C, Cr).astype(jnp.float32)                  # (C, Cr)

    # Only override when the smallest default scoped limit (v5e: 16 MiB) might
    # be insufficient; never exceed physical VMEM.
    vmem_limit = None if vmem_needed <= (16 << 20) else int(min(vmem_needed, vmem_cap))

    kernel = _make_mam_kernel(1.0 / float(hw_true))
    return pl.pallas_call(
        kernel,
        out_shape=jax.ShapeDtypeStruct((N, C, HW_p), x3.dtype),
        grid_spec=pltpu.PrefetchScalarGridSpec(
            num_scalar_prefetch=0,
            grid=(N,),
            in_specs=[
                # Last-two block dims equal the full array dims -> legal for
                # any C / HW, no wrapper-side padding copy required.
                pl.BlockSpec((1, C, HW_p), lambda n: (n, 0, 0)),
                # Constant index_map -> weights fetched once, not per step.
                pl.BlockSpec((C, Cr), lambda n: (0, 0)),
                pl.BlockSpec((C, Cr), lambda n: (0, 0)),
            ],
            out_specs=pl.BlockSpec((1, C, HW_p), lambda n: (n, 0, 0)),
        ),
        compiler_params=pltpu.CompilerParams(
            dimension_semantics=("parallel",),
            vmem_limit_bytes=vmem_limit),
    )(x3, w1t, w2m)


# -------- fallback path: HW-tiled two-pass (stats pass, then blend pass) --------

def _make_stats_kernel(hw_true, thw, hw_p):
    ragged = (hw_p % thw) != 0  # last tile may read past the array end

    def stats_kernel(x_ref, s1_ref, s2_ref):
        t = pl.program_id(1)

        @pl.when(t == 0)
        def _():
            s1_ref[...] = jnp.zeros_like(s1_ref)
            s2_ref[...] = jnp.zeros_like(s2_ref)

        xf = x_ref[0].astype(jnp.float32)                  # (C, thw)
        if ragged:
            lane = lax.broadcasted_iota(jnp.int32, xf.shape, 1)
            xf = jnp.where(t * thw + lane < hw_true, xf, 0.0)
        s1_ref[0] += jnp.sum(xf, axis=1, keepdims=True)
        s2_ref[0] += jnp.sum(xf * xf, axis=1, keepdims=True)

    return stats_kernel


def _blend_kernel(x_ref, a_ref, b_ref, o_ref):
    x = x_ref[0]                                           # (C, thw)
    a = a_ref[0]                                           # (C, 1) f32
    b = b_ref[0]                                           # (C, 1) f32
    if o_ref.dtype == jnp.bfloat16:
        o_ref[0] = x * a.astype(jnp.bfloat16) + b.astype(jnp.bfloat16)
    else:
        o_ref[0] = (x.astype(jnp.float32) * a + b).astype(o_ref.dtype)
    # Ragged-tail out-of-bounds writes of the last tile are masked by Pallas.


def _mam_hw_tiled(x3, w1, w2, hw_true, tile_hw=None):
    N, C, HW_p = x3.shape
    Cr = w1.shape[0]
    itemsize = jnp.dtype(x3.dtype).itemsize

    if tile_hw is None:
        # ~2 MiB per (C, thw) block: amortizes the ~0.35us grid-step overhead
        # while in/out double-buffering + f32 temps stay far below VMEM on v7x.
        tile_hw = (2 << 20) // max(1, C * itemsize)
    thw = max(128, (int(tile_hw) // 128) * 128)
    thw = int(min(thw, pl.cdiv(HW_p, 128) * 128))
    T = pl.cdiv(HW_p, thw)

    # ---- pass 1: per-(n, c) sum and sum-of-squares (f32 accumulators) ----
    s1, s2 = pl.pallas_call(
        _make_stats_kernel(hw_true, thw, HW_p),
        out_shape=(jax.ShapeDtypeStruct((N, C, 1), jnp.float32),
                   jax.ShapeDtypeStruct((N, C, 1), jnp.float32)),
        grid_spec=pltpu.PrefetchScalarGridSpec(
            num_scalar_prefetch=0,
            grid=(N, T),
            in_specs=[pl.BlockSpec((1, C, thw), lambda n, t: (n, 0, t))],
            out_specs=(pl.BlockSpec((1, C, 1), lambda n, t: (n, 0, 0)),
                       pl.BlockSpec((1, C, 1), lambda n, t: (n, 0, 0))),
        ),
        compiler_params=pltpu.CompilerParams(
            dimension_semantics=("parallel", "arbitrary")),
    )(x3)

    # ---- tiny per-channel math (N*C elements) in plain JAX ----
    pooled = s1[:, :, 0] / float(hw_true)
    var = jnp.maximum(s2[:, :, 0] / float(hw_true) - pooled * pooled, 0.0)
    inv_std = lax.rsqrt(var + EPS)
    w1m = w1.reshape(Cr, C).astype(jnp.float32)
    w2m = w2.reshape(C, Cr).astype(jnp.float32)
    hidden = jnp.maximum(pooled @ w1m.T, 0.0)
    mask = jax.nn.sigmoid(hidden @ w2m.T)
    one_m = 1.0 - mask
    a = (mask + one_m * inv_std)[:, :, None]               # (N, C, 1)
    b = (-(pooled * one_m * inv_std))[:, :, None]           # (N, C, 1)

    # ---- pass 2: streaming blend out = x*a + b ----
    # Both grid axes "parallel": on v7x both TensorCores stream HBM even for N==1.
    return pl.pallas_call(
        _blend_kernel,
        out_shape=jax.ShapeDtypeStruct((N, C, HW_p), x3.dtype),
        grid_spec=pltpu.PrefetchScalarGridSpec(
            num_scalar_prefetch=0,
            grid=(N, T),
            in_specs=[pl.BlockSpec((1, C, thw), lambda n, t: (n, 0, t)),
                      pl.BlockSpec((1, C, 1), lambda n, t: (n, 0, 0)),
                      pl.BlockSpec((1, C, 1), lambda n, t: (n, 0, 0))],
            out_specs=pl.BlockSpec((1, C, thw), lambda n, t: (n, 0, t)),
        ),
        compiler_params=pltpu.CompilerParams(
            dimension_semantics=("parallel", "parallel")),
    )(x3, a, b)


# ------------------------------- public wrapper -------------------------------

def mam_forward(x_nchw, w1, w2, *, force_tiled=False, tile_hw=None):
    """x_nchw: (N, C, H, W); w1: (C//r, C, 1, 1); w2: (C, C//r, 1, 1)."""
    N, C, H, W = x_nchw.shape
    HW = H * W
    Cr = w1.shape[0]

    # Free view: no pad / copy on the common path.
    x3 = x_nchw.reshape(N, C, HW)

    # Lane padding only for tiny spatial maps (keeps output stores lane-dense);
    # stats divide by the TRUE HW so zero padding never biases them.
    # TODO(synk): for HW < 128 with very large C, a transposed (1, HW, C)
    # layout (C on lanes) would avoid even this small pad.
    HW_p = HW
    if HW < 128:
        HW_p = 128
        x3 = jnp.pad(x3, ((0, 0), (0, 0), (0, HW_p - HW)))

    # VMEM budget for the single-block path: in + out double-buffered, one full
    # f32 temp slab (covers the upcast for non-f32 I/O), weights, headroom.
    itemsize = jnp.dtype(x3.dtype).itemsize
    block_bytes = C * HW_p * itemsize
    vmem_needed = 4 * block_bytes + C * HW_p * 4 + 2 * C * Cr * 4 + (4 << 20)
    vmem_cap = _vmem_capacity_bytes()

    if force_tiled or vmem_needed > vmem_cap:
        out3 = _mam_hw_tiled(x3, w1, w2, HW, tile_hw=tile_hw)
    else:
        out3 = _mam_single_block(x3, w1, w2, HW, vmem_needed, vmem_cap)

    if HW_p != HW:
        out3 = out3[:, :, :HW]
    return out3.reshape(N, C, H, W)


def mam_reference(x, w1, w2):
    """Pure-JAX reference mirroring the PyTorch module."""
    N, C, H, W = x.shape
    Cr = w1.shape[0]
    pooled = jnp.mean(x, axis=(2, 3))                          # (N, C)
    hidden = jnp.maximum(pooled @ w1.reshape(Cr, C).T, 0.0)    # (N, Cr)
    mask = jax.nn.sigmoid(hidden @ w2.reshape(C, Cr).T)        # (N, C)
    mask = mask[:, :, None, None]
    mean = jnp.mean(x, axis=(2, 3), keepdims=True)
    var = jnp.mean((x - mean) ** 2, axis=(2, 3), keepdims=True)
    x_in = (x - mean) / jnp.sqrt(var + EPS)
    return x * mask + x_in * (1.0 - mask)


if __name__ == "__main__":
    # dim must be divisible by r=16 for the bottleneck conv, so use dim=32.
    batch, dim, r, H, W = 2, 32, 16, 16, 16

    key = jax.random.PRNGKey(0)
    kx, k1, k2 = jax.random.split(key, 3)
    x = jax.random.normal(kx, (batch, dim, H, W), dtype=jnp.float32)
    w1 = jax.random.normal(k1, (dim // r, dim, 1, 1), dtype=jnp.float32) * 0.1
    w2 = jax.random.normal(k2, (dim, dim // r, 1, 1), dtype=jnp.float32) * 0.1

    ref = mam_reference(x, w1, w2)

    # 1) Fast single-block path (default).
    out = jax.block_until_ready(mam_forward(x, w1, w2))
    assert out.shape == x.shape
    assert jnp.allclose(out, ref, atol=1e-4, rtol=1e-4), "single-block mismatch"

    # 2) HW-tiled two-pass fallback (forced so it is exercised at small shapes).
    out_t = jax.block_until_ready(mam_forward(x, w1, w2, force_tiled=True, tile_hw=128))
    assert jnp.allclose(out_t, ref, atol=1e-4, rtol=1e-4), "tiled-fallback mismatch"

    # 3) bf16 I/O (blend runs in bf16; stats stay f32) -> looser tolerance.
    xb = x.astype(jnp.bfloat16)
    out_b = jax.block_until_ready(mam_forward(xb, w1, w2))
    ref_b = mam_reference(xb.astype(jnp.float32), w1, w2)
    assert jnp.allclose(out_b.astype(jnp.float32), ref_b, atol=5e-2, rtol=5e-2), \
        "bf16 mismatch"

    print("KERNEL_OK")
</pallas_src>

<mosaic_0001>
module attributes {stable_mosaic.version = 11 : i64} {
  func.func @mam_kernel(%arg0: i32, %arg1: memref<1x32x256xf32, #tpu.memory_space<vmem>>, %arg2: memref<32x2xf32, #tpu.memory_space<vmem>>, %arg3: memref<32x2xf32, #tpu.memory_space<vmem>>, %arg4: memref<1x32x256xf32, #tpu.memory_space<vmem>>) attributes {dimension_semantics = [#tpu.dimension_semantics<parallel>], iteration_bounds = array<i64: 2>, scalar_prefetch = 0 : i64, scratch_operands = 0 : i64, tpu.core_type = #tpu.core_type<tc>, window_params = [{transform_indices = @transform_0, window_bounds = array<i64: 1, 32, 256>}, {pipeline_mode = #tpu.pipeline_mode<synchronous>, transform_indices = @transform_1, window_bounds = array<i64: 32, 2>}, {pipeline_mode = #tpu.pipeline_mode<synchronous>, transform_indices = @transform_2, window_bounds = array<i64: 32, 2>}, {transform_indices = @transform_3, window_bounds = array<i64: 1, 32, 256>}]} {
    %c0 = arith.constant 0 : index
    %c0_0 = arith.constant 0 : index
    %c0_1 = arith.constant 0 : index
    %0 = vector.load %arg1[%c0, %c0_0, %c0_1] : memref<1x32x256xf32, #tpu.memory_space<vmem>>, vector<1x32x256xf32>
    %1 = vector.shape_cast %0 : vector<1x32x256xf32> to vector<32x256xf32>
    %cst = arith.constant dense<0.000000e+00> : vector<32xf32>
    %2 = vector.multi_reduction <add>, %1, %cst [1] : vector<32x256xf32> to vector<32xf32>
    %3 = vector.shape_cast %2 : vector<32xf32> to vector<32x1xf32>
    %4 = arith.mulf %1, %1 : vector<32x256xf32>
    %cst_2 = arith.constant dense<0.000000e+00> : vector<32xf32>
    %5 = vector.multi_reduction <add>, %4, %cst_2 [1] : vector<32x256xf32> to vector<32xf32>
    %6 = vector.shape_cast %5 : vector<32xf32> to vector<32x1xf32>
    %cst_3 = arith.constant 3.906250e-03 : f32
    %7 = vector.broadcast %cst_3 : f32 to vector<32x1xf32>
    %8 = arith.mulf %3, %7 : vector<32x1xf32>
    %cst_4 = arith.constant 3.906250e-03 : f32
    %9 = vector.broadcast %cst_4 : f32 to vector<32x1xf32>
    %10 = arith.mulf %6, %9 : vector<32x1xf32>
    %11 = arith.mulf %8, %8 : vector<32x1xf32>
    %12 = arith.subf %10, %11 : vector<32x1xf32>
    %cst_5 = arith.constant 0.000000e+00 : f32
    %13 = vector.broadcast %cst_5 : f32 to vector<32x1xf32>
    %14 = arith.maximumf %12, %13 : vector<32x1xf32>
    %cst_6 = arith.constant 9.99999974E-6 : f32
    %15 = vector.broadcast %cst_6 : f32 to vector<32x1xf32>
    %16 = arith.addf %14, %15 : vector<32x1xf32>
    %17 = math.rsqrt %16 : vector<32x1xf32>
    %c0_7 = arith.constant 0 : index
    %c0_8 = arith.constant 0 : index
    %18 = vector.load %arg2[%c0_7, %c0_8] : memref<32x2xf32, #tpu.memory_space<vmem>>, vector<32x2xf32>
    %19 = vector.broadcast %8 : vector<32x1xf32> to vector<32x2xf32>
    %20 = arith.mulf %18, %19 : vector<32x2xf32>
    %cst_9 = arith.constant dense<0.000000e+00> : vector<2xf32>
    %21 = vector.multi_reduction <add>, %20, %cst_9 [0] : vector<32x2xf32> to vector<2xf32>
    %22 = vector.shape_cast %21 : vector<2xf32> to vector<1x2xf32>
    %cst_10 = arith.constant 0.000000e+00 : f32
    %23 = vector.broadcast %cst_10 : f32 to vector<1x2xf32>
    %24 = arith.maximumf %22, %23 : vector<1x2xf32>
    %c0_11 = arith.constant 0 : index
    %c0_12 = arith.constant 0 : index
    %25 = vector.load %arg3[%c0_11, %c0_12] : memref<32x2xf32, #tpu.memory_space<vmem>>, vector<32x2xf32>
    %26 = vector.broadcast %24 : vector<1x2xf32> to vector<32x2xf32>
    %27 = arith.mulf %25, %26 : vector<32x2xf32>
    %cst_13 = arith.constant dense<0.000000e+00> : vector<32xf32>
    %28 = vector.multi_reduction <add>, %27, %cst_13 [1] : vector<32x2xf32> to vector<32xf32>
    %29 = vector.shape_cast %28 : vector<32xf32> to vector<32x1xf32>
    %30 = arith.negf %29 : vector<32x1xf32>
    %31 = math.exp %30 : vector<32x1xf32>
    %cst_14 = arith.constant 1.000000e+00 : f32
    %32 = vector.broadcast %cst_14 : f32 to vector<32x1xf32>
    %33 = arith.addf %32, %31 : vector<32x1xf32>
    %34 = arith.divf %32, %33 : vector<32x1xf32>
    %cst_15 = arith.constant 1.000000e+00 : f32
    %35 = vector.broadcast %cst_15 : f32 to vector<32x1xf32>
    %36 = arith.subf %35, %34 : vector<32x1xf32>
    %37 = arith.mulf %36, %17 : vector<32x1xf32>
    %38 = arith.addf %34, %37 : vector<32x1xf32>
    %39 = arith.mulf %8, %36 : vector<32x1xf32>
    %40 = arith.mulf %39, %17 : vector<32x1xf32>
    %cst_16 = arith.constant 0.000000e+00 : f32
    %41 = vector.broadcast %cst_16 : f32 to vector<32x1xf32>
    %42 = arith.subf %41, %40 : vector<32x1xf32>
    %43 = vector.broadcast %38 : vector<32x1xf32> to vector<32x256xf32>
    %44 = arith.mulf %1, %43 : vector<32x256xf32>
    %45 = vector.broadcast %42 : vector<32x1xf32> to vector<32x256xf32>
    %46 = arith.addf %44, %45 : vector<32x256xf32>
    %c0_17 = arith.constant 0 : index
    %c0_18 = arith.constant 0 : index
    %c0_19 = arith.constant 0 : index
    %47 = vector.load %arg4[%c0_17, %c0_18, %c0_19] : memref<1x32x256xf32, #tpu.memory_space<vmem>>, vector<1x32x256xf32>
    %48 = vector.shape_cast %47 : vector<1x32x256xf32> to vector<32x256xf32>
    %49 = vector.shape_cast %46 : vector<32x256xf32> to vector<1x32x256xf32>
    tpu.vector_store %arg4[%c0_17, %c0_18, %c0_19], %49 {strides = array<i32>} : memref<1x32x256xf32, #tpu.memory_space<vmem>>, vector<1x32x256xf32>,
    return
  }
  func.func @transform_0(%arg0: i32) -> (i32, i32, i32) {
    %c0_i32 = arith.constant 0 : i32
    %c0_i32_0 = arith.constant 0 : i32
    %c0_i32_1 = arith.constant 0 : i32
    return %arg0, %c0_i32, %c0_i32_0 : i32, i32, i32
  }
  func.func @transform_1(%arg0: i32) -> (i32, i32) {
    %c0_i32 = arith.constant 0 : i32
    %c0_i32_0 = arith.constant 0 : i32
    %c0_i32_1 = arith.constant 0 : i32
    return %c0_i32, %c0_i32_0 : i32, i32
  }
  func.func @transform_2(%arg0: i32) -> (i32, i32) {
    %c0_i32 = arith.constant 0 : i32
    %c0_i32_0 = arith.constant 0 : i32
    %c0_i32_1 = arith.constant 0 : i32
    return %c0_i32, %c0_i32_0 : i32, i32
  }
  func.func @transform_3(%arg0: i32) -> (i32, i32, i32) {
    %c0_i32 = arith.constant 0 : i32
    %c0_i32_0 = arith.constant 0 : i32
    %c0_i32_1 = arith.constant 0 : i32
    return %arg0, %c0_i32, %c0_i32_0 : i32, i32, i32
  }
}

</mosaic_0001>

<bundles_post_ra>
// kernel: tpu_custom_call.1
= control target key start
LH: loop header
LB: loop body
LE: loop exit
PB: predicated region body
PF: predicated region fallthrough
CT: control target
= control target key end

     0   :  { %8 = vsyncpa [#allocation3], 0  ;;  %s935_s0 = inlined_call_operand.hbm [shape: f32[2,32,256], index: 0, kind: input, shape index: {}]   ;;  %s936_s1 = inlined_call_operand.vmem [shape: f32[32,2], index: 1, kind: input, shape index: {}]   ;;  %s937_s2 = inlined_call_operand.vmem [shape: f32[32,2], index: 2, kind: input, shape index: {}]   ;;  %s938_s3 = inlined_call_operand.hbm [shape: f32[2,32,256], index: 3, kind: output, shape index: {}]  }
   0x1   :  { %10 = vsyncpa [#allocation3 + $0x1], 0 }
   0x2   :  { %11 = vsyncpa [#allocation4], 0 }
   0x3   :  { %13 = vsyncpa [#allocation4 + $0x1], 0  ;;  %s673_s12 = smov 0   ;;  %s675_s13 = smov 0  }
   0x4   :  { %s677_s14 = smov 0   ;;  %s679_s15 = smov 0  }
   0x5 LB: > { %s694_s16 = sadd.s32 4294967295, %s645_s15   ;;  %s459_s17 = sadd.s32 4294967294, %s645_s15   ;;  %s645_s15 = sphi %s679_s15, %s953_s15   ;;  %s641_s14 = sphi %s677_s14, %s952_s14   ;;  %s637_s13 = sphi %s675_s13, %s951_s13   ;;  %s633_s12 = sphi %s673_s12, %s950_s12  }
   0x6   : > { %s698_s18 = sadd.s32 1, %s645_s15   ;;  %s26_s19 = sadd.s32 1, %s641_s14 }
   0x7   : > { %s23_s20 = ssub.s32 %s645_s15, %s698_s18  ;;  %p33_p0 = scmp.ne.s32.totalorder %s641_s14, %s637_s13 }
   0x8   : > { %p24_p1 = scmp.eq.s32.totalorder %s23_s20, 0  ;;  %p34_p2 = scmp.eq.s32.totalorder %s645_s15, 0 }
   0x9   : > { %p39_p3 = scmp.ne.s32.totalorder %s637_s13, %s633_s12  ;;  %p40_p4 = scmp.eq.s32.totalorder %s694_s16, 0 }
   0xa   : > { %s710_s21 = scalar_select %p24_p1, %s641_s14, %s26_s19  }
   0xb   : > { %p712_p5 = por %p34_p2, %p33_p0  ;;  %p716_p6 = por %p40_p4, %p39_p3 }
   0xc   : > { %p105_p7 = scmp.eq.s32.totalorder %s694_s16, 1  ;;  %p111_p8 = scmp.eq.s32.totalorder %s459_s17, 1 }
   0xd   : > { %s942_s23 = scalar_select %p716_p6, 1, 0 }
   0xe   : > { %p491_p10 = scmp.lt.s32.totalorder %s645_s15, 2  ;;  %p723_p11 = por %p105_p7, %p33_p0 }
   0xf   : > { %p727_p12 = por %p111_p8, %p39_p3  ;;  %s137_s26 = sand.u32 1, %s641_s14  }
  0x10   : > { %s943_s24 = scalar_select %p723_p11, 1, 0 }
  0x11   : > { %s944_s25 = scalar_select %p727_p12, 1, 0 }
  0x12   : > { %s477_s27 = sshll.u32 %s645_s15, 10  ;;  %s462_s28 = sshll.u32 %s137_s26, 6 }
  0x13   : > { %s736_s4 = scalar_lea.hbm %s935_s0, %s477_s27  ;;  %s141_s5 = scalar_lea.vmem [#allocation2], %s462_s28 }
  0x14   : > { %s148_s6 = sshll.u32 %s141_s5, 4  ;;  %p740_p13 = pnand %p491_p10, %p712_p5  ;;  %s744_s6 = int_to_ptr.vmem [resolvable:$true] %s148_s6 }
  0x15   : > { %s746_s8 = scalar_lea.sflag [#allocation3], %s137_s26  ;;  %s553_s9 = scalar_lea.hbm %s736_s4, 1024 }
  0x16   : > { %p554_p0 = scmp.ne.s32.totalorder %s736_s4, %s553_s9  ;;  %p555_p1 = pneg %p740_p13 }
  0x17   : > { %s558_s17 = scalar_lea.hbm %s935_s0, 2048  ;;  %p559_p4 = scmp.lt.s32.totalorder %s736_s4, %s935_s0 }
  0x18   : > { %p556_p2 = pnand %p555_p1, %p554_p0  ;;  %p560_p5 = scmp.lt.s32.totalorder %s558_s17, %s553_s9 }
  0x1a   : > { %p557_p3 = pneg %p556_p2  ;;  %p561_p7 = por %p560_p5, %p559_p4 }
  0x1c   : > { %p562_p8 = pnand %p561_p7, %p557_p3 }
  0x1e   : > { %565 = shalt.err (!%p562_p8)
}
  0x1f   : > { %s566_s22 = scalar_lea.vmem %s744_s6, 1024  ;;  %s647_s26 = smov [#allocation2]  }
  0x20   : > { %p567_p10 = scmp.ne.s32.totalorder %s744_s6, %s566_s22  ;;  %s571_s27 = sshll.u32 %s647_s26, 4  ;;  %s572_s27 = int_to_ptr.vmem [resolvable:$false] %s571_s27 }
  0x21   : > { %s573_s28 = scalar_lea.vmem %s572_s27, 2048  ;;  %p574_p2 = scmp.lt.s32.totalorder %s744_s6, %s572_s27 }
  0x22   : > { %p569_p9 = pnand %p567_p10, %p555_p1  ;;  %p575_p12 = scmp.lt.s32.totalorder %s573_s28, %s566_s22 }
  0x24   : > { %p570_p0 = pneg %p569_p9  ;;  %p576_p11 = por %p575_p12, %p574_p2 }
  0x26   : > { %p577_p6 = pnand %p576_p11, %p570_p0 }
  0x28   : > { %580 = shalt.err (!%p577_p6)
}
  0x29   : > { %s648_s29 = smov 256   ;;  %s649_s30 = smov 16  }
  0x2a   : > { %486 = dma.hbm_to_vmem [thread:$0]  (!%p740_p13), %s736_s4, 1024, %s744_s6, %s746_s8, %s648_s29, %s648_s29, %s649_s30  }
  0x2b   : > { %p465_p9 = scmp.ge.s32.totalorder %s645_s15, 1  ;;  %p156_p1 = scmp.lt.s32.totalorder %s645_s15, 3 }
  0x2d   : > { %p157_p3 = pnand %p465_p9, %p156_p1 }
  0x2e   : > { %s770_s5 = sand.u32 (!%p157_p3), 1, %s637_s13   ;;  %p946_p6 = scmp.ne.s32.totalorder (!%p157_p3), %s942_s23, 0 }
  0x2f   : > { %160 = sbr.rel (%p157_p3) target bundleno = 427 (0x1ab), region = 32  ;;  %s466_s9 = sshll.u32 (!%p157_p3), %s770_s5, 6 }
  0x30   : > { %s163_s10 = scalar_lea.sflag (!%p157_p3), [#allocation3], %s770_s5  ;;  %s166_s11 = scalar_lea.vmem (!%p157_p3), [#allocation2], %s466_s9 }
  0x34   : > { %624 = dma.done.wait (%p946_p6), %s163_s10, 1024  }
  0x35   : > { %626 = vsyncadd (%p946_p6), %s163_s10, 4294966272  ;;  %v780_v0 = vld [vmem:[%s166_s11] sm:$0xff]  ;;  %v782_v1 = vld [vmem:[%s166_s11 + $0x8] sm:$0xff]  ;;  %vm265_vm0 = vcmask 15360   ;;  %s188_s23 = scalar_lea.vmem [#allocation5], %s466_s9  ;;  %s478_s4 = sshll.u32 %s694_s16, 10 }
  0x36   : > { %v784_v2 = vld [vmem:[%s166_s11 + $0x20] sm:$0xff]  ;;  %v197_v3 = vadd.f32 %v782_v1, %v780_v0  ;;  %v788_v4 = vld [vmem:[%s166_s11 + $0x28] sm:$0xff]  ;;  %v790_v5 = vld [vmem:[%s166_s11 + $0x10] sm:$0xff]  ;;  %v209_v50 = vmul.f32 %v780_v0, %v780_v0  ;;  %v210_v51 = vmul.f32 %v782_v1, %v782_v1  ;;  %s386_s6 = sshll.u32 %s188_s23, 4  ;;  %s890_s8 = scalar_lea.hbm %s938_s3, %s478_s4  ;;  %s892_s6 = int_to_ptr.vmem [resolvable:$true] %s386_s6 }
  0x37   : > { %v792_v6 = vld [vmem:[%s166_s11 + $0x18] sm:$0xff]  ;;  %v203_v7 = vadd.f32 %v788_v4, %v784_v2  ;;  %v796_v8 = vld [vmem:[%s166_s11 + $0x30] sm:$0xff]  ;;  %v257_v15 = vld [vmem:[%s936_s1] sm:$0xff]  ;;  %v211_v48 = vmul.f32 %v790_v5, %v790_v5  ;;  %v213_v62 = vmul.f32 %v784_v2, %v784_v2  ;;  %v214_v63 = vmul.f32 %v788_v4, %v788_v4  ;;  %s373_s16 = scalar_lea.sflag [#allocation4], %s770_s5  ;;  %s581_s17 = scalar_lea.vmem %s892_s6, 1024 }
  0x38   : > { %v798_v9 = vld [vmem:[%s166_s11 + $0x38] sm:$0xff]  ;;  %198 = vadd.xlane.f32.xlu0 %v197_v3  ;;  %v200_v10 = vadd.f32 %v792_v6, %v790_v5  ;;  %v259_v17 = vld [vmem:[%s936_s1 + $0x10] sm:$0xff]  ;;  %v258_v18 = vld [vmem:[%s936_s1 + $0x8] sm:$0xff]  ;;  %v212_v49 = vmul.f32 %v792_v6, %v792_v6  ;;  %v217_v59 = vadd.f32 %v210_v51, %v209_v50  ;;  %v215_v60 = vmul.f32 %v796_v8, %v796_v8  ;;  %p582_p11 = scmp.ne.s32.totalorder %s892_s6, %s581_s17  ;;  %p947_p12 = scmp.ne.s32.totalorder %s943_s24, 0 }
  0x39   : > { %204 = vadd.xlane.f32.xlu1 %v203_v7  ;;  %v206_v11 = vadd.f32 %v798_v9, %v796_v8  ;;  %v260_v22 = vld [vmem:[%s936_s1 + $0x18] sm:$0xff]  ;;  %v281_v41 = vld [vmem:[%s937_s2 + $0x8] sm:$0xff]  ;;  %v280_v42 = vld [vmem:[%s937_s2] sm:$0xff]  ;;  %v216_v61 = vmul.f32 %v798_v9, %v798_v9  ;;  %v223_v7 = vadd.f32 %v214_v63, %v213_v62  ;;  %s650_s19 = smov [#allocation5]  }
  0x3a   : > { %v283_v44 = vld [vmem:[%s937_s2 + $0x18] sm:$0xff]  ;;  %v282_v45 = vld [vmem:[%s937_s2 + $0x10] sm:$0xff]  ;;  %v220_v56 = vadd.f32 %v212_v49, %v211_v48  ;;  %p583_p13 = pnand %p582_p11, %p947_p12  ;;  %s585_s20 = sshll.u32 %s650_s19, 4  ;;  %s586_s20 = int_to_ptr.vmem [resolvable:$false] %s585_s20 }
  0x3b   : > { %v226_v3 = vadd.f32 %v216_v61, %v215_v60  ;;  %s587_s22 = scalar_lea.vmem %s586_s20, 2048  ;;  %p588_p5 = scmp.lt.s32.totalorder %s892_s6, %s586_s20 }
  0x3c   : > { %201 = vadd.xlane.f32.xlu0 %v200_v10  ;;  %p584_p4 = pneg %p583_p13  ;;  %p589_p7 = scmp.lt.s32.totalorder %s587_s22, %s581_s17 }
  0x3d   : > { %207 = vadd.xlane.f32.xlu1 %v206_v11 }
  0x3e   : > { %p590_p8 = por %p589_p7, %p588_p5 }
  0x40   : > { %p591_p10 = pnand %p590_p8, %p584_p4 }
  0xc1   : > { %v199_v12 = vpop.xlane.xlu0 %198 }
  0xc2   : > { %v804_v13 = vmul.f32 0.00390625, %v199_v12  ;;  %v205_v14 = vpop.xlane.xlu1 %204 }
  0xc3   : > { %v809_v16 = vmul.f32 0.00390625, %v205_v14 }
  0xc4   : > { %v261_v20 = vmul.f32 %v257_v15, %v804_v13 }
  0xc5   : > { %v202_v19 = vpop.xlane.xlu0 %201  ;;  %v263_v25 = vmul.f32 %v259_v17, %v809_v16 }
  0xc6   : > { %v818_v21 = vmul.f32 0.00390625, %v202_v19  ;;  %v208_v23 = vpop.xlane.xlu1 %207  ;;  %v266_v28 = vsel %vm265_vm0, %v261_v20, 0.0 }
  0xc7   : > { %v823_v24 = vmul.f32 0.00390625, %v208_v23  ;;  %v269_v31 = vsel %vm265_vm0, %v263_v25, 0.0 }
  0xc8   : > { %v262_v26 = vmul.f32 %v258_v18, %v818_v21  ;;  %v238_v25 = vmul.f32 %v818_v21, %v818_v21 }
  0xc9   : > { %v264_v27 = vmul.f32 %v260_v22, %v823_v24 }
  0xca   : > { %v267_v29 = vsel %vm265_vm0, %v262_v26, 0.0  ;;  %v237_v26 = vmul.f32 %v804_v13, %v804_v13 }
  0xcb   : > { %v268_v30 = vadd.f32 %v267_v29, %v266_v28  ;;  %v271_v32 = vsel %vm265_vm0, %v264_v27, 0.0 }
  0xcd   : > { %v270_v33 = vadd.f32 %v269_v31, %v268_v30 }
  0xcf   : > { %v272_v34 = vadd.f32 %v271_v32, %v270_v33  ;;  %v240_v33 = vmul.f32 %v823_v24, %v823_v24 }
  0xd1   : > { %v273_v35 = vrot.slane %v272_v34, 4 }
  0xd3   : > { %v274_v36 = vadd.f32 %v273_v35, %v272_v34 }
  0xd5   : > { %v275_v37 = vrot.slane %v274_v36, 2 }
  0xd7   : > { %v276_v38 = vadd.f32 %v275_v37, %v274_v36  ;;  %v239_v37 = vmul.f32 %v809_v16, %v809_v16 }
  0xd9   : > { %v277_v39 = vrot.slane %v276_v38, 1 }
  0xdb   : > { %v278_v40 = vadd.f32 %v277_v39, %v276_v38 }
  0xdd   : > { %v279_v43 = vmax.f32 %v278_v40, 0.0 }
  0xdf   : > { %v285_v46 = vmul.f32 %v281_v41, %v279_v43  ;;  %v284_v47 = vmul.f32 %v280_v42, %v279_v43  ;;  %v287_v54 = vmul.f32 %v283_v44, %v279_v43  ;;  %v286_v55 = vmul.f32 %v282_v45, %v279_v43 }
  0xe1   : > { %v291_v52 = vsel %vm265_vm0, %v285_v46, 0.0  ;;  %v288_v53 = vsel %vm265_vm0, %v284_v47, 0.0  ;;  %v297_v57 = vsel %vm265_vm0, %v287_v54, 0.0  ;;  %v294_v58 = vsel %vm265_vm0, %v286_v55, 0.0 }
  0xe2   : > { %292 = vadd.xlane.f32.xlu1 %v291_v52  ;;  %289 = vadd.xlane.f32.xlu0 %v288_v53 }
  0xe6   : > { %298 = vadd.xlane.f32.xlu1 %v297_v57  ;;  %295 = vadd.xlane.f32.xlu0 %v294_v58 }
  0xea   : > { %221 = vadd.xlane.f32.xlu1 %v220_v56  ;;  %218 = vadd.xlane.f32.xlu0 %v217_v59 }
  0xee   : > { %227 = vadd.xlane.f32.xlu1 %v226_v3  ;;  %224 = vadd.xlane.f32.xlu0 %v223_v7 }
 0x16b   : > { %v293_v10 = vpop.xlane.xlu1 %292  ;;  %v290_v11 = vpop.xlane.xlu0 %289 }
 0x16c   : > { %v469_v12 = vmul.f32 -1.442695, %v293_v10  ;;  %v468_v14 = vmul.f32 -1.442695, %v290_v11 }
 0x16e   : > { %529 = vpow2.f32 %v469_v12 }
 0x16f   : > { %531 = vpow2.f32 %v468_v14  ;;  %v299_v15 = vpop.xlane.xlu1 %298  ;;  %v296_v17 = vpop.xlane.xlu0 %295 }
 0x170   : > { %v471_v18 = vmul.f32 -1.442695, %v299_v15  ;;  %v470_v19 = vmul.f32 -1.442695, %v296_v17 }
 0x172   : > { %533 = vpow2.f32 %v471_v18 }
 0x173   : > { %535 = vpow2.f32 %v470_v19  ;;  %v222_v20 = vpop.xlane.xlu1 %221  ;;  %v219_v22 = vpop.xlane.xlu0 %218 }
 0x174   : > { %v234_v23 = vmul.f32 0.00390625, %v222_v20  ;;  %v233_v27 = vmul.f32 0.00390625, %v219_v22 }
 0x176   : > { %v242_v28 = vsub.f32 %v234_v23, %v238_v25  ;;  %v241_v29 = vsub.f32 %v233_v27, %v237_v26 }
 0x177   : > { %v228_v30 = vpop.xlane.xlu1 %227  ;;  %v225_v31 = vpop.xlane.xlu0 %224 }
 0x178   : > { %v246_v32 = vmax.f32 %v242_v28, 0.0  ;;  %v236_v34 = vmul.f32 0.00390625, %v228_v30  ;;  %v235_v35 = vmul.f32 0.00390625, %v225_v31  ;;  %v245_v36 = vmax.f32 %v241_v29, 0.0 }
 0x17a   : > { %v244_v38 = vsub.f32 %v236_v34, %v240_v33  ;;  %v243_v40 = vsub.f32 %v235_v35, %v239_v37  ;;  %v250_v43 = vadd.f32 1e-05, %v246_v32  ;;  %v249_v45 = vadd.f32 1e-05, %v245_v36 }
 0x17b   : > { %v530_v39 = vpop.eup %529 }
 0x17c   : > { %v532_v41 = vpop.eup %531  ;;  %v313_v42 = vadd.f32 1.0, %v530_v39  ;;  %v248_v46 = vmax.f32 %v244_v38, 0.0  ;;  %v247_v48 = vmax.f32 %v243_v40, 0.0 }
 0x17d   : > { %v312_v44 = vadd.f32 1.0, %v532_v41 }
 0x17e   : > { %537 = vrcp.f32 %v313_v42  ;;  %v252_v52 = vadd.f32 1e-05, %v248_v46  ;;  %v251_v53 = vadd.f32 1e-05, %v247_v48 }
 0x17f   : > { %v534_v47 = vpop.eup %533  ;;  %539 = vrcp.f32 %v312_v44 }
 0x180   : > { %v536_v49 = vpop.eup %535  ;;  %v315_v50 = vadd.f32 1.0, %v534_v47  ;;  %541 = vrsqrt.f32 %v250_v43 }
 0x181   : > { %v314_v51 = vadd.f32 1.0, %v536_v49  ;;  %543 = vrsqrt.f32 %v249_v45 }
 0x182   : > { %545 = vrcp.f32 %v315_v50 }
 0x183   : > { %547 = vrcp.f32 %v314_v51 }
 0x184   : > { %549 = vrsqrt.f32 %v252_v52 }
 0x185   : > { %551 = vrsqrt.f32 %v251_v53 }
 0x18b   : > { %v538_v54 = vpop.eup %537 }
 0x18c   : > { %v540_v55 = vpop.eup %539  ;;  %v325_v56 = vsub.f32 1.0, %v538_v54 }
 0x18d   : > { %v542_v57 = vpop.eup %541  ;;  %v324_v58 = vsub.f32 1.0, %v540_v55 }
 0x18e   : > { %v544_v59 = vpop.eup %543  ;;  %v337_v60 = vmul.f32 %v325_v56, %v818_v21  ;;  %v329_v61 = vmul.f32 %v542_v57, %v325_v56 }
 0x18f   : > { %v546_v62 = vpop.eup %545  ;;  %v336_v63 = vmul.f32 %v324_v58, %v804_v13  ;;  %v328_v3 = vmul.f32 %v544_v59, %v324_v58 }
 0x190   : > { %v548_v7 = vpop.eup %547  ;;  %v327_v10 = vsub.f32 1.0, %v546_v62  ;;  %v333_v11 = vadd.f32 %v538_v54, %v329_v61  ;;  %v341_v12 = vmul.f32 %v542_v57, %v337_v60 }
 0x191   : > { %v326_v14 = vsub.f32 1.0, %v548_v7  ;;  %v332_v15 = vadd.f32 %v540_v55, %v328_v3  ;;  %v340_v17 = vmul.f32 %v544_v59, %v336_v63  ;;  %v550_v18 = vpop.eup %549 }
 0x192   : > { %v345_v19 = vsub.f32 0.0, %v341_v12  ;;  %v350_v20 = vmul.f32 %v333_v11, %v790_v5  ;;  %v351_v22 = vmul.f32 %v333_v11, %v792_v6  ;;  %v339_v21 = vmul.f32 %v327_v10, %v823_v24  ;;  %v552_v27 = vpop.eup %551 }
 0x193   : > { %v344_v23 = vsub.f32 0.0, %v340_v17  ;;  %v348_v13 = vmul.f32 %v332_v15, %v780_v0  ;;  %v349_v25 = vmul.f32 %v332_v15, %v782_v1  ;;  %v331_v26 = vmul.f32 %v550_v18, %v327_v10 }
 0x194   : > { %v358_v28 = vadd.f32 %v350_v20, %v345_v19  ;;  %v359_v29 = vadd.f32 %v351_v22, %v345_v19  ;;  %v343_v30 = vmul.f32 %v550_v18, %v339_v21  ;;  %v338_v31 = vmul.f32 %v326_v14, %v809_v16 }
 0x195   : > { %v356_v32 = vadd.f32 %v348_v13, %v344_v23  ;;  %v357_v5 = vadd.f32 %v349_v25, %v344_v23  ;;  %v335_v33 = vadd.f32 %v546_v62, %v331_v26  ;;  %v330_v34 = vmul.f32 %v552_v27, %v326_v14 }
 0x196   : > { %366 = vst [vmem:[%s188_s23 + $0x10] sm:$0xff] %v358_v28  ;;  %367 = vst [vmem:[%s188_s23 + $0x18] sm:$0xff] %v359_v29  ;;  %v347_v6 = vsub.f32 0.0, %v343_v30  ;;  %v342_v0 = vmul.f32 %v552_v27, %v338_v31 }
 0x197   : > { %364 = vst [vmem:[%s188_s23] sm:$0xff] %v356_v32  ;;  %365 = vst [vmem:[%s188_s23 + $0x8] sm:$0xff] %v357_v5  ;;  %v354_v1 = vmul.f32 %v335_v33, %v796_v8  ;;  %v355_v24 = vmul.f32 %v335_v33, %v798_v9  ;;  %v334_v35 = vadd.f32 %v548_v7, %v330_v34 }
 0x198   : > { %v346_v16 = vsub.f32 0.0, %v342_v0 }
 0x199   : > { %v362_v36 = vadd.f32 %v354_v1, %v347_v6  ;;  %v363_v37 = vadd.f32 %v355_v24, %v347_v6  ;;  %v352_v38 = vmul.f32 %v334_v35, %v784_v2  ;;  %v353_v39 = vmul.f32 %v334_v35, %v788_v4 }
 0x19b   : > { %370 = vst [vmem:[%s188_s23 + $0x30] sm:$0xff] %v362_v36  ;;  %371 = vst [vmem:[%s188_s23 + $0x38] sm:$0xff] %v363_v37  ;;  %v360_v8 = vadd.f32 %v352_v38, %v346_v16  ;;  %v361_v9 = vadd.f32 %v353_v39, %v346_v16 }
 0x19d   : > { %368 = vst [vmem:[%s188_s23 + $0x20] sm:$0xff] %v360_v8  ;;  %369 = vst [vmem:[%s188_s23 + $0x28] sm:$0xff] %v361_v9 }
 0x19e   : > { %594 = shalt.err (!%p591_p10)
}
 0x19f   : > { %s595_s26 = scalar_lea.hbm %s890_s8, 1024  ;;  %s599_s29 = scalar_lea.hbm %s938_s3, 2048 }
 0x1a0   : > { %p596_p0 = scmp.ne.s32.totalorder %s890_s8, %s595_s26  ;;  %p600_p1 = scmp.lt.s32.totalorder %s890_s8, %s938_s3 }
 0x1a1   : > { %p601_p3 = scmp.lt.s32.totalorder %s599_s29, %s595_s26 }
 0x1a2   : > { %p597_p2 = pnand %p596_p0, %p947_p12 }
 0x1a3   : > { %p602_p6 = por %p601_p3, %p600_p1 }
 0x1a4   : > { %p598_p9 = pneg %p597_p2 }
 0x1a6   : > { %p603_p11 = pnand %p602_p6, %p598_p9 }
 0x1a8   : > { %606 = shalt.err (!%p603_p11)
}
 0x1a9   : > { %s651_s11 = smov 256   ;;  %s652_s23 = smov 16  }
 0x1aa   : > { %481 = dma.vmem_to_hbm [thread:$0]  (%p947_p12), %s892_s6, 1024, %s890_s8, %s373_s16, %s651_s11, %s651_s11, %s652_s23  }
 0x1ab PF: > { %s401_s4 = sand.u32 1, %s633_s12   ;;  %p948_p13 = scmp.ne.s32.totalorder %s944_s25, 0 }
 0x1ac   : > { %p949_p4 = scmp.ge.s32.totalorder %s645_s15, 2  ;;  %s402_s9 = scalar_lea.sflag [#allocation4], %s401_s4 }
 0x1ae   : > { %p488_p5 = pnand %p949_p4, %p948_p13 }
 0x1b0   : > { %p489_p7 = pneg %p488_p5 }
 0x1b2   : > { %628 = dma.done.wait (%p489_p7), %s402_s9, 1024  }
 0x1b3   : > { %630 = vsyncadd (%p489_p7), %s402_s9, 4294966272  ;;  %p16_p8 = scmp.ge.s32.totalorder %s698_s18, 4   ;;  %s950_s12 = smov %s637_s13 }
 0x1b4   : > { %s951_s13 = smov %s641_s14  ;;  %s952_s14 = smov %s710_s21 }
 0x1b5   : > { %s953_s15 = smov %s698_s18  ;;  %18 = sbr.rel (!%p16_p8) target bundleno = 5 (0x5), region = 77 }
 0x1ba   :  { %407 = vsyncpa [#allocation3], 1 }
 0x1bb   :  { %409 = vsyncpa [#allocation3 + $0x1], 1 }
 0x1bc   :  { %410 = vsyncpa [#allocation4], 1 }
 0x1bd   :  { %412 = vsyncpa [#allocation4 + $0x1], 1 }

</bundles_post_ra>
